<compile_context>
chip_gen: v5e
topology: v5e:2x2
jax: 0.10.0
libtpu: 0.0.40
codegen_flags: <defaults>
</compile_context>

<pallas_src>
import jax
import jax.numpy as jnp
from jax.experimental import pallas as pl
from jax.experimental.pallas import tpu as pltpu


def _lstm_kernel(x_hbm, wih_ref, whh_ref, b_ref, out_ref,
                 x_vmem, xproj, seq_buf, h_mat, c_buf):
    l = pl.program_id(0)
    num_layers = pl.num_programs(0)
    TB, H = seq_buf.shape
    Bp = h_mat.shape[0]
    T = TB // Bp
    in_max = x_vmem.shape[1]

    bias = b_ref[0]                       # (1, 4H) f32; i/f/o columns pre-scaled by 0.5

    # ---- hoisted input projection (+ folded bias): one big GEMM per layer ----
    @pl.when(l == 0)
    def _():
        # x is copied HBM -> VMEM exactly once for the whole call (single copy).
        pltpu.sync_copy(x_hbm, x_vmem)
        xproj[...] = jnp.dot(x_vmem[...], wih_ref[0],
                             preferred_element_type=jnp.float32) + bias

    @pl.when(l > 0)
    def _():
        w_full = wih_ref[0]                                   # (In_max, 4H)
        # TODO(synk): when input_size >> H, pass a separate (H, 4H) weight stack
        # for layers > 0 so the padded (In_max-H)*4H columns are never DMA'd.
        w_in = w_full if in_max == H else w_full[0:H, :]
        xproj[...] = jnp.dot(seq_buf[...], w_in,
                             preferred_element_type=jnp.float32) + bias

    # h0 = c0 = 0 at the start of every layer.
    h_mat[...] = jnp.zeros_like(h_mat)
    c_buf[...] = jnp.zeros_like(c_buf)

    whh = whh_ref[0]                      # (H, 4H) resident; i/f/o columns pre-scaled
    is_last_layer = l == num_layers - 1
    feeds_next_layer = l + 1 < num_layers

    # ---- serial recurrence: per step one (Bp,H)x(H,4H) MXU matmul, ONE tanh
    #      pass over the (Bp,4H) tile (sigmoid = 0.5*(1+tanh(x/2)), exact),
    #      plus VPU elementwise state updates. No per-step bias add or cast.
    @pl.loop(0, T)
    def _(t):
        row = pl.multiple_of(t * Bp, Bp)  # sublane-aligned (Bp = 8 f32 / 16 bf16)
        gates = (xproj[pl.ds(row, Bp), :]
                 + jnp.dot(h_mat[...], whh, preferred_element_type=jnp.float32))
        act = jnp.tanh(gates)             # single EUP pass over all four gate slabs
        i_g = act[:, 0:H] * 0.5 + 0.5     # sigmoid via pre-scaled argument
        f_g = act[:, H:2 * H] * 0.5 + 0.5
        g_g = act[:, 2 * H:3 * H]         # g columns were not pre-scaled -> plain tanh
        o_g = act[:, 3 * H:4 * H] * 0.5 + 0.5
        c_new = f_g * c_buf[...] + i_g * g_g
        h_new = o_g * jnp.tanh(c_new)
        c_buf[...] = c_new
        h_lo = h_new.astype(h_mat.dtype)  # matmul-dtype h, reused as next-step LHS
        h_mat[...] = h_lo

        @pl.when(feeds_next_layer)        # last layer's sequence is never consumed
        def _():
            seq_buf[pl.ds(row, Bp), :] = h_lo

        @pl.when(jnp.logical_and(is_last_layer, t == T - 1))
        def _():
            out_ref[...] = h_new.astype(out_ref.dtype)


def _lstm_pallas(x2d, wih_stack, whh_stack, b_stack, *, T, Bp, H):
    L, In_max, four_h = wih_stack.shape
    io_dtype = wih_stack.dtype
    isz = jnp.dtype(io_dtype).itemsize

    # Derive the VMEM limit from the actual footprint instead of hard-coding it.
    scratch_bytes = (T * Bp * In_max * isz          # resident x copy (single buffer)
                     + T * Bp * four_h * 4          # xproj (f32 accumulator)
                     + T * Bp * H * isz             # seq_buf (weight dtype)
                     + Bp * H * isz                 # h state (matmul dtype)
                     + Bp * H * 4)                  # c state (f32)
    pipeline_bytes = 2 * (In_max * four_h * isz     # W_ih (double buffered)
                          + H * four_h * isz        # W_hh (double buffered)
                          + four_h * 4              # bias
                          + Bp * H * 4)             # output block
    vmem_limit = int(min(max((scratch_bytes + pipeline_bytes) * 5 // 4 + (2 << 20),
                             16 << 20),
                         56 << 20))                 # cap: headroom on v7x (64 MiB)

    grid_spec = pltpu.PrefetchScalarGridSpec(
        num_scalar_prefetch=0,
        grid=(L,),
        in_specs=[
            pl.BlockSpec(memory_space=pl.ANY),                       # x stays in HBM
            pl.BlockSpec((1, In_max, four_h), lambda l: (l, 0, 0)),  # W_ih^T per layer
            pl.BlockSpec((1, H, four_h), lambda l: (l, 0, 0)),       # W_hh^T per layer
            pl.BlockSpec((1, 1, four_h), lambda l: (l, 0, 0)),       # bias per layer (f32)
        ],
        out_specs=pl.BlockSpec((Bp, H), lambda l: (0, 0)),
        scratch_shapes=[
            pltpu.VMEM((T * Bp, In_max), io_dtype),     # x, resident across all layers
            pltpu.VMEM((T * Bp, four_h), jnp.float32),  # hoisted x-projection (+bias)
            pltpu.VMEM((T * Bp, H), io_dtype),          # layer output sequence
            pltpu.VMEM((Bp, H), io_dtype),              # h state in matmul dtype
            pltpu.VMEM((Bp, H), jnp.float32),           # c state (f32)
        ],
    )
    # TODO(synk): production — tile T (stream xproj/seq_buf with make_async_copy)
    # and shard batch across v7x's two TensorCores (grid=(2, L), "parallel").
    return pl.pallas_call(
        _lstm_kernel,
        grid_spec=grid_spec,
        out_shape=jax.ShapeDtypeStruct((Bp, H), jnp.float32),
        compiler_params=pltpu.CompilerParams(
            dimension_semantics=("arbitrary",),         # layers are inherently serial
            vmem_limit_bytes=vmem_limit,
        ),
    )(x2d, wih_stack, whh_stack, b_stack)


@jax.jit
def lstm_forward(x, wih_stack, whh_stack, b_stack, wlin, blin):
    """Forward of the PyTorch module: Linear(LSTM(x)[0][-1]).

    x: (T, B, input_size) f32 (seq-first, like nn.LSTM batch_first=False).
    Packed (pre-scaled) weights from pack_lstm_params (f32 or bf16).
    """
    T, B, input_size = x.shape
    H = whh_stack.shape[1]
    In_max = wih_stack.shape[1]
    dtype = wih_stack.dtype
    # bf16 buffers pack 16 rows per sublane; f32 packs 8 — pad batch accordingly.
    row_align = 8 * max(1, 4 // jnp.dtype(dtype).itemsize)
    Bp = ((B + row_align - 1) // row_align) * row_align

    xp = jnp.zeros((T, Bp, In_max), dtype)
    xp = xp.at[:, :B, :input_size].set(x.astype(dtype))
    x2d = xp.reshape(T * Bp, In_max)                 # big-M layout for the hoisted GEMM

    h_last = _lstm_pallas(x2d, wih_stack, whh_stack, b_stack, T=T, Bp=Bp, H=H)

    # Final Linear on output[-1, :, :] — plain XLA GEMM (used once).
    return h_last[:B].astype(jnp.float32) @ wlin.T + blin


def pack_lstm_params(wih, whh, bih, bhh, input_size, num_hidden, dtype):
    """Stack/transpose per-layer torch-layout LSTM weights for the kernel.

    wih[l]: (4H, in_l), whh[l]: (4H, H), bih/bhh[l]: (4H,). Input weights are
    zero-padded on the feature axis to In_max = max(input_size, H). The i/f/o
    gate columns are pre-scaled by 0.5 (exact, power of two) so the kernel can
    compute sigmoid with a single tanh pass. Biases stay f32.
    """
    L = len(wih)
    H = num_hidden
    In_max = max(input_size, H)
    # torch gate order along the 4H axis: [i, f, g, o] — scale i, f, o by 0.5.
    scale = jnp.concatenate([jnp.full((2 * H,), 0.5, jnp.float32),
                             jnp.ones((H,), jnp.float32),
                             jnp.full((H,), 0.5, jnp.float32)])
    wih_stack = jnp.zeros((L, In_max, 4 * H), jnp.float32)
    for l in range(L):
        in_l = wih[l].shape[1]
        wih_stack = wih_stack.at[l, :in_l, :].set(wih[l].T * scale[None, :])
    whh_stack = jnp.stack([w.T * scale[None, :] for w in whh], axis=0)       # (L, H, 4H)
    b_stack = jnp.stack([((bih[l] + bhh[l]) * scale).reshape(1, 4 * H)
                         for l in range(L)], axis=0)                          # (L, 1, 4H)
    return wih_stack.astype(dtype), whh_stack.astype(dtype), b_stack


def lstm_reference(x, wih, whh, bih, bhh, wlin, blin):
    """Pure-JAX reference matching torch.nn.LSTM + Linear(output[-1])."""
    T, B, _ = x.shape
    L = len(wih)
    H = whh[0].shape[1]
    layer_in = x
    for l in range(L):
        h = jnp.zeros((B, H), jnp.float32)
        c = jnp.zeros((B, H), jnp.float32)
        outs = []
        for t in range(T):
            gates = (layer_in[t] @ wih[l].T + bih[l]
                     + h @ whh[l].T + bhh[l])
            i_g = jax.nn.sigmoid(gates[:, 0:H])
            f_g = jax.nn.sigmoid(gates[:, H:2 * H])
            g_g = jnp.tanh(gates[:, 2 * H:3 * H])
            o_g = jax.nn.sigmoid(gates[:, 3 * H:4 * H])
            c = f_g * c + i_g * g_g
            h = o_g * jnp.tanh(c)
            outs.append(h)
        layer_in = jnp.stack(outs, axis=0)
    return layer_in[-1] @ wlin.T + blin


if __name__ == "__main__":
    # Small shapes consistent with the module's forward.
    input_size = 16
    batch_size = 2
    output_size = 8
    num_hidden = 32
    num_layers = 2
    seq_len = 8

    key = jax.random.PRNGKey(0)
    k = 1.0 / jnp.sqrt(jnp.float32(num_hidden))

    def uni(key, shape):
        return jax.random.uniform(key, shape, jnp.float32, minval=-k, maxval=k)

    keys = jax.random.split(key, 4 * num_layers + 3)
    wih, whh, bih, bhh = [], [], [], []
    ki = 0
    for l in range(num_layers):
        in_l = input_size if l == 0 else num_hidden
        wih.append(uni(keys[ki], (4 * num_hidden, in_l))); ki += 1
        whh.append(uni(keys[ki], (4 * num_hidden, num_hidden))); ki += 1
        bih.append(uni(keys[ki], (4 * num_hidden,))); ki += 1
        bhh.append(uni(keys[ki], (4 * num_hidden,))); ki += 1
    wlin = uni(keys[ki], (output_size, num_hidden)); ki += 1
    blin = uni(keys[ki], (output_size,)); ki += 1
    x = jax.random.normal(keys[ki], (seq_len, batch_size, input_size), jnp.float32)

    ref = lstm_reference(x, wih, whh, bih, bhh, wlin, blin)

    # ---- f32 path: must match the f32 reference tightly -------------------
    p32 = pack_lstm_params(wih, whh, bih, bhh, input_size, num_hidden, jnp.float32)
    out32 = lstm_forward(x, p32[0], p32[1], p32[2], wlin, blin)
    out32 = jax.block_until_ready(out32)
    assert out32.shape == (batch_size, output_size)
    err32 = jnp.max(jnp.abs(out32 - ref))
    assert jnp.allclose(out32, ref, rtol=1e-4, atol=1e-4), f"f32 mismatch: {err32}"

    # ---- bf16 weights/activations (MXU-native on v6e/v7x), f32 accum/state --
    p16 = pack_lstm_params(wih, whh, bih, bhh, input_size, num_hidden, jnp.bfloat16)
    out16 = lstm_forward(x, p16[0], p16[1], p16[2], wlin, blin)
    out16 = jax.block_until_ready(out16)
    assert out16.shape == (batch_size, output_size)
    err16 = jnp.max(jnp.abs(out16 - ref))
    assert jnp.allclose(out16, ref, rtol=1e-1, atol=1e-1), f"bf16 mismatch: {err16}"

    print("KERNEL_OK")
</pallas_src>

<mosaic_0001>
module attributes {stable_mosaic.version = 11 : i64} {
  func.func @_lstm_kernel(%arg0: i32, %arg1: memref<64x32xf32, #tpu.memory_space<any>>, %arg2: memref<1x32x128xf32, #tpu.memory_space<vmem>>, %arg3: memref<1x32x128xf32, #tpu.memory_space<vmem>>, %arg4: memref<1x1x128xf32, #tpu.memory_space<vmem>>, %arg5: memref<8x32xf32, #tpu.memory_space<vmem>>, %arg6: memref<64x32xf32, #tpu.memory_space<vmem>>, %arg7: memref<64x128xf32, #tpu.memory_space<vmem>>, %arg8: memref<64x32xf32, #tpu.memory_space<vmem>>, %arg9: memref<8x32xf32, #tpu.memory_space<vmem>>, %arg10: memref<8x32xf32, #tpu.memory_space<vmem>>) attributes {dimension_semantics = [#tpu.dimension_semantics<arbitrary>], iteration_bounds = array<i64: 2>, scalar_prefetch = 0 : i64, scratch_operands = 5 : i64, tpu.core_type = #tpu.core_type<tc>, window_params = [{}, {transform_indices = @transform_1, window_bounds = array<i64: 1, 32, 128>}, {transform_indices = @transform_2, window_bounds = array<i64: 1, 32, 128>}, {transform_indices = @transform_3, window_bounds = array<i64: 1, 1, 128>}, {pipeline_mode = #tpu.pipeline_mode<synchronous>, transform_indices = @transform_4, window_bounds = array<i64: 8, 32>}]} {
    %c0 = arith.constant 0 : index
    %c0_0 = arith.constant 0 : index
    %c0_1 = arith.constant 0 : index
    %0 = vector.load %arg4[%c0, %c0_0, %c0_1] : memref<1x1x128xf32, #tpu.memory_space<vmem>>, vector<1x1x128xf32>
    %1 = vector.shape_cast %0 : vector<1x1x128xf32> to vector<1x128xf32>
    %c0_i32 = arith.constant 0 : i32
    %2 = arith.cmpi eq, %arg0, %c0_i32 : i32
    %3 = arith.extui %2 : i1 to i32
    %c0_i32_2 = arith.constant 0 : i32
    %4 = arith.cmpi ne, %3, %c0_i32_2 : i32
    scf.if %4 {
      "tpu.region"() ({
        %25 = tpu.sem_alloc : memref<!tpu.dma_semaphore, #tpu.memory_space<semaphore_mem>>
        tpu.enqueue_dma source(%arg1 : memref<64x32xf32, #tpu.memory_space<any>>) target(%arg6 : memref<64x32xf32, #tpu.memory_space<vmem>>) target_semaphore(%25 : memref<!tpu.dma_semaphore, #tpu.memory_space<semaphore_mem>>)
        tpu.wait_dma2 semaphore(%25 : memref<!tpu.dma_semaphore, #tpu.memory_space<semaphore_mem>>) src(%arg1 : memref<64x32xf32, #tpu.memory_space<any>>) dst(%arg6 : memref<64x32xf32, #tpu.memory_space<vmem>>)
        tpu.yield
      }) : () -> ()
      %c0_17 = arith.constant 0 : index
      %c0_18 = arith.constant 0 : index
      %18 = vector.load %arg6[%c0_17, %c0_18] : memref<64x32xf32, #tpu.memory_space<vmem>>, vector<64x32xf32>
      %c0_19 = arith.constant 0 : index
      %c0_20 = arith.constant 0 : index
      %c0_21 = arith.constant 0 : index
      %19 = vector.load %arg2[%c0_19, %c0_20, %c0_21] : memref<1x32x128xf32, #tpu.memory_space<vmem>>, vector<1x32x128xf32>
      %20 = vector.shape_cast %19 : vector<1x32x128xf32> to vector<32x128xf32>
      %cst_22 = arith.constant dense<0.000000e+00> : vector<64x128xf32>
      %21 = tpu.matmul %18, %20, %cst_22 {dimension_numbers = #tpu.dot_dimension_numbers<[1], [0], [0], [1], [0, 0, 1, 1], [], []>} : vector<64x32xf32>, vector<32x128xf32>, vector<64x128xf32> -> vector<64x128xf32>
      %22 = vector.broadcast %1 : vector<1x128xf32> to vector<64x128xf32>
      %23 = arith.addf %21, %22 : vector<64x128xf32>
      %c0_23 = arith.constant 0 : index
      %c0_24 = arith.constant 0 : index
      %24 = vector.load %arg7[%c0_23, %c0_24] : memref<64x128xf32, #tpu.memory_space<vmem>>, vector<64x128xf32>
      tpu.vector_store %arg7[%c0_23, %c0_24], %23 {strides = array<i32>} : memref<64x128xf32, #tpu.memory_space<vmem>>, vector<64x128xf32>,
    } else {
    }
    %c0_i32_3 = arith.constant 0 : i32
    %5 = arith.cmpi sgt, %arg0, %c0_i32_3 : i32
    %6 = arith.extui %5 : i1 to i32
    %c0_i32_4 = arith.constant 0 : i32
    %7 = arith.cmpi ne, %6, %c0_i32_4 : i32
    scf.if %7 {
      %c0_17 = arith.constant 0 : index
      %c0_18 = arith.constant 0 : index
      %c0_19 = arith.constant 0 : index
      %18 = vector.load %arg2[%c0_17, %c0_18, %c0_19] : memref<1x32x128xf32, #tpu.memory_space<vmem>>, vector<1x32x128xf32>
      %19 = vector.shape_cast %18 : vector<1x32x128xf32> to vector<32x128xf32>
      %c0_20 = arith.constant 0 : index
      %c0_21 = arith.constant 0 : index
      %20 = vector.load %arg8[%c0_20, %c0_21] : memref<64x32xf32, #tpu.memory_space<vmem>>, vector<64x32xf32>
      %cst_22 = arith.constant dense<0.000000e+00> : vector<64x128xf32>
      %21 = tpu.matmul %20, %19, %cst_22 {dimension_numbers = #tpu.dot_dimension_numbers<[1], [0], [0], [1], [0, 0, 1, 1], [], []>} : vector<64x32xf32>, vector<32x128xf32>, vector<64x128xf32> -> vector<64x128xf32>
      %22 = vector.broadcast %1 : vector<1x128xf32> to vector<64x128xf32>
      %23 = arith.addf %21, %22 : vector<64x128xf32>
      %c0_23 = arith.constant 0 : index
      %c0_24 = arith.constant 0 : index
      %24 = vector.load %arg7[%c0_23, %c0_24] : memref<64x128xf32, #tpu.memory_space<vmem>>, vector<64x128xf32>
      tpu.vector_store %arg7[%c0_23, %c0_24], %23 {strides = array<i32>} : memref<64x128xf32, #tpu.memory_space<vmem>>, vector<64x128xf32>,
    } else {
    }
    %cst = arith.constant 0.000000e+00 : f32
    %8 = vector.broadcast %cst : f32 to vector<8x32xf32>
    %c0_5 = arith.constant 0 : index
    %c0_6 = arith.constant 0 : index
    %9 = vector.load %arg9[%c0_5, %c0_6] : memref<8x32xf32, #tpu.memory_space<vmem>>, vector<8x32xf32>
    tpu.vector_store %arg9[%c0_5, %c0_6], %8 {strides = array<i32>} : memref<8x32xf32, #tpu.memory_space<vmem>>, vector<8x32xf32>,
    %cst_7 = arith.constant 0.000000e+00 : f32
    %10 = vector.broadcast %cst_7 : f32 to vector<8x32xf32>
    %c0_8 = arith.constant 0 : index
    %c0_9 = arith.constant 0 : index
    %11 = vector.load %arg10[%c0_8, %c0_9] : memref<8x32xf32, #tpu.memory_space<vmem>>, vector<8x32xf32>
    tpu.vector_store %arg10[%c0_8, %c0_9], %10 {strides = array<i32>} : memref<8x32xf32, #tpu.memory_space<vmem>>, vector<8x32xf32>,
    %c0_10 = arith.constant 0 : index
    %c0_11 = arith.constant 0 : index
    %c0_12 = arith.constant 0 : index
    %12 = vector.load %arg3[%c0_10, %c0_11, %c0_12] : memref<1x32x128xf32, #tpu.memory_space<vmem>>, vector<1x32x128xf32>
    %13 = vector.shape_cast %12 : vector<1x32x128xf32> to vector<32x128xf32>
    %c1_i32 = arith.constant 1 : i32
    %14 = arith.cmpi eq, %arg0, %c1_i32 : i32
    %c1_i32_13 = arith.constant 1 : i32
    %15 = arith.addi %arg0, %c1_i32_13 : i32
    %c2_i32 = arith.constant 2 : i32
    %16 = arith.cmpi slt, %15, %c2_i32 : i32
    %c0_i32_14 = arith.constant 0 : i32
    %c8_i32 = arith.constant 8 : i32
    %17 = arith.addi %c0_i32_14, %c8_i32 : i32
    %c1_i32_15 = arith.constant 1 : i32
    scf.for %arg11 = %c0_i32_14 to %17 step %c1_i32_15  : i32 {
      %c1_i32_17 = arith.constant 1 : i32
      %18 = arith.muli %arg11, %c1_i32_17 : i32
      %c0_i32_18 = arith.constant 0 : i32
      %19 = arith.addi %c0_i32_18, %18 : i32
      %c8_i32_19 = arith.constant 8 : i32
      %20 = arith.muli %19, %c8_i32_19 : i32
      %21 = tpu.assume_multiple %20, 8 : i32
      %22 = arith.index_cast %21 : i32 to index
      %c0_20 = arith.constant 0 : index
      %23 = vector.load %arg7[%22, %c0_20] : memref<64x128xf32, #tpu.memory_space<vmem>>, vector<8x128xf32>
      %c0_21 = arith.constant 0 : index
      %c0_22 = arith.constant 0 : index
      %24 = vector.load %arg9[%c0_21, %c0_22] : memref<8x32xf32, #tpu.memory_space<vmem>>, vector<8x32xf32>
      %cst_23 = arith.constant dense<0.000000e+00> : vector<8x128xf32>
      %25 = tpu.matmul %24, %13, %cst_23 {dimension_numbers = #tpu.dot_dimension_numbers<[1], [0], [0], [1], [0, 0, 1, 1], [], []>} : vector<8x32xf32>, vector<32x128xf32>, vector<8x128xf32> -> vector<8x128xf32>
      %26 = arith.addf %23, %25 : vector<8x128xf32>
      %27 = math.tanh %26 : vector<8x128xf32>
      %28 = vector.extract_strided_slice %27 {offsets = [0, 0], sizes = [8, 32], strides = [1, 1]} : vector<8x128xf32> to vector<8x32xf32>
      %cst_24 = arith.constant 5.000000e-01 : f32
      %29 = vector.broadcast %cst_24 : f32 to vector<8x32xf32>
      %30 = arith.mulf %28, %29 : vector<8x32xf32>
      %cst_25 = arith.constant 5.000000e-01 : f32
      %31 = vector.broadcast %cst_25 : f32 to vector<8x32xf32>
      %32 = arith.addf %30, %31 : vector<8x32xf32>
      %33 = vector.extract_strided_slice %27 {offsets = [0, 32], sizes = [8, 32], strides = [1, 1]} : vector<8x128xf32> to vector<8x32xf32>
      %cst_26 = arith.constant 5.000000e-01 : f32
      %34 = vector.broadcast %cst_26 : f32 to vector<8x32xf32>
      %35 = arith.mulf %33, %34 : vector<8x32xf32>
      %cst_27 = arith.constant 5.000000e-01 : f32
      %36 = vector.broadcast %cst_27 : f32 to vector<8x32xf32>
      %37 = arith.addf %35, %36 : vector<8x32xf32>
      %38 = vector.extract_strided_slice %27 {offsets = [0, 64], sizes = [8, 32], strides = [1, 1]} : vector<8x128xf32> to vector<8x32xf32>
      %39 = vector.extract_strided_slice %27 {offsets = [0, 96], sizes = [8, 32], strides = [1, 1]} : vector<8x128xf32> to vector<8x32xf32>
      %cst_28 = arith.constant 5.000000e-01 : f32
      %40 = vector.broadcast %cst_28 : f32 to vector<8x32xf32>
      %41 = arith.mulf %39, %40 : vector<8x32xf32>
      %cst_29 = arith.constant 5.000000e-01 : f32
      %42 = vector.broadcast %cst_29 : f32 to vector<8x32xf32>
      %43 = arith.addf %41, %42 : vector<8x32xf32>
      %c0_30 = arith.constant 0 : index
      %c0_31 = arith.constant 0 : index
      %44 = vector.load %arg10[%c0_30, %c0_31] : memref<8x32xf32, #tpu.memory_space<vmem>>, vector<8x32xf32>
      %45 = arith.mulf %37, %44 : vector<8x32xf32>
      %46 = arith.mulf %32, %38 : vector<8x32xf32>
      %47 = arith.addf %45, %46 : vector<8x32xf32>
      %48 = math.tanh %47 : vector<8x32xf32>
      %49 = arith.mulf %43, %48 : vector<8x32xf32>
      %c0_32 = arith.constant 0 : index
      %c0_33 = arith.constant 0 : index
      %50 = vector.load %arg10[%c0_32, %c0_33] : memref<8x32xf32, #tpu.memory_space<vmem>>, vector<8x32xf32>
      tpu.vector_store %arg10[%c0_32, %c0_33], %47 {strides = array<i32>} : memref<8x32xf32, #tpu.memory_space<vmem>>, vector<8x32xf32>,
      %c0_34 = arith.constant 0 : index
      %c0_35 = arith.constant 0 : index
      %51 = vector.load %arg9[%c0_34, %c0_35] : memref<8x32xf32, #tpu.memory_space<vmem>>, vector<8x32xf32>
      tpu.vector_store %arg9[%c0_34, %c0_35], %49 {strides = array<i32>} : memref<8x32xf32, #tpu.memory_space<vmem>>, vector<8x32xf32>,
      %52 = arith.extui %16 : i1 to i32
      %c0_i32_36 = arith.constant 0 : i32
      %53 = arith.cmpi ne, %52, %c0_i32_36 : i32
      scf.if %53 {
        %58 = arith.index_cast %21 : i32 to index
        %c0_38 = arith.constant 0 : index
        %59 = vector.load %arg8[%58, %c0_38] : memref<64x32xf32, #tpu.memory_space<vmem>>, vector<8x32xf32>
        tpu.vector_store %arg8[%58, %c0_38], %49 {strides = array<i32>} : memref<64x32xf32, #tpu.memory_space<vmem>>, vector<8x32xf32>,
      } else {
      }
      %c7_i32 = arith.constant 7 : i32
      %54 = arith.cmpi eq, %19, %c7_i32 : i32
      %55 = arith.andi %14, %54 : i1
      %56 = arith.extui %55 : i1 to i32
      %c0_i32_37 = arith.constant 0 : i32
      %57 = arith.cmpi ne, %56, %c0_i32_37 : i32
      scf.if %57 {
        %c0_38 = arith.constant 0 : index
        %c0_39 = arith.constant 0 : index
        %58 = vector.load %arg5[%c0_38, %c0_39] : memref<8x32xf32, #tpu.memory_space<vmem>>, vector<8x32xf32>
        tpu.vector_store %arg5[%c0_38, %c0_39], %49 {strides = array<i32>} : memref<8x32xf32, #tpu.memory_space<vmem>>, vector<8x32xf32>,
      } else {
      }
    }
    %c8_i32_16 = arith.constant 8 : i32
    return
  }
  func.func @transform_1(%arg0: i32) -> (i32, i32, i32) {
    %c0_i32 = arith.constant 0 : i32
    %c0_i32_0 = arith.constant 0 : i32
    %c0_i32_1 = arith.constant 0 : i32
    return %arg0, %c0_i32, %c0_i32_0 : i32, i32, i32
  }
  func.func @transform_2(%arg0: i32) -> (i32, i32, i32) {
    %c0_i32 = arith.constant 0 : i32
    %c0_i32_0 = arith.constant 0 : i32
    %c0_i32_1 = arith.constant 0 : i32
    return %arg0, %c0_i32, %c0_i32_0 : i32, i32, i32
  }
  func.func @transform_3(%arg0: i32) -> (i32, i32, i32) {
    %c0_i32 = arith.constant 0 : i32
    %c0_i32_0 = arith.constant 0 : i32
    %c0_i32_1 = arith.constant 0 : i32
    return %arg0, %c0_i32, %c0_i32_0 : i32, i32, i32
  }
  func.func @transform_4(%arg0: i32) -> (i32, i32) {
    %c0_i32 = arith.constant 0 : i32
    %c0_i32_0 = arith.constant 0 : i32
    %c0_i32_1 = arith.constant 0 : i32
    return %c0_i32, %c0_i32_0 : i32, i32
  }
}

</mosaic_0001>

<bundles_post_ra>
// kernel: lstm_forward.1
= control target key start
LH: loop header
LB: loop body
LE: loop exit
PB: predicated region body
PF: predicated region fallthrough
CT: control target
= control target key end

     0   :  { %9 = vsyncpa [#allocation8], 0  ;;  %s1009_s0 = inlined_call_operand.vmem [shape: f32[64,32], index: 0, kind: input, shape index: {}]   ;;  %s1010_s1 = inlined_call_operand.vmem [shape: f32[2,32,128], index: 1, kind: input, shape index: {}]   ;;  %s1011_s2 = inlined_call_operand.hbm [shape: f32[2,32,128], index: 2, kind: input, shape index: {}]   ;;  %s1012_s3 = inlined_call_operand.vmem [shape: f32[2,1,128], index: 3, kind: input, shape index: {}]   ;;  %s1013_s4 = inlined_call_operand.vmem [shape: f32[8,32], index: 4, kind: output, shape index: {}]  }
   0x1   :  { %11 = vsyncpa [#allocation8 + $0x1], 0  ;;  %s821_s15 = smov 0   ;;  %s823_s16 = smov 0  }
   0x2   :  { %s825_s17 = smov 0   ;;  %s827_s18 = smov 0  }
   0x3 LB: > { %s840_s19 = sadd.s32 4294967295, %s784_s18   ;;  %s843_s20 = sadd.s32 1, %s784_s18   ;;  %s784_s18 = sphi %s827_s18, %s1020_s18   ;;  %s780_s17 = sphi %s825_s17, %s1019_s17   ;;  %s776_s16 = sphi %s823_s16, %s1018_s16   ;;  %s772_s15 = sphi %s821_s15, %s1017_s15  }
   0x4   : > { %s47_s21 = ssub.s32 %s784_s18, %s843_s20  ;;  %s50_s22 = sadd.s32 1, %s780_s17 }
   0x5   : > { %p48_p0 = scmp.eq.s32.totalorder %s47_s21, 0  ;;  %p57_p1 = scmp.ne.s32.totalorder %s780_s17, %s776_s16 }
   0x6   : > { %p58_p2 = scmp.eq.s32.totalorder %s784_s18, 0  ;;  %p63_p3 = scmp.ne.s32.totalorder %s776_s16, %s772_s15 }
   0x7   : > { %s853_s23 = scalar_select %p48_p0, %s780_s17, %s50_s22  }
   0x8   : > { %p855_p4 = por %p58_p2, %p57_p1  ;;  %p64_p5 = scmp.eq.s32.totalorder %s840_s19, 0 }
   0x9   : > { %p663_p6 = scmp.lt.s32.totalorder %s784_s18, 2  ;;  %s142_s26 = sand.u32 1, %s780_s17  }
   0xa   : > { %p861_p7 = por %p64_p5, %p63_p3  ;;  %s601_s27 = sshll.u32 %s142_s26, 5 }
   0xb   : > { %s631_s28 = sshll.u32 %s784_s18, 5  ;;  %s146_s6 = scalar_lea.vmem [#allocation7], %s601_s27 }
   0xc   : > { %s151_s5 = scalar_lea.hbm %s1011_s2, %s631_s28  ;;  %s154_s7 = sshll.u32 %s146_s6, 4  ;;  %s155_s7 = int_to_ptr.vmem [resolvable:$true] %s154_s7 }
   0xd   : > { %s152_s8 = sshll.u32 %s151_s5, 4  ;;  %p872_p8 = pnand %p663_p6, %p855_p4  ;;  %s153_s8 = int_to_ptr.hbm [resolvable:$true] %s152_s8 }
   0xe   : > { %p604_p9 = scmp.ge.s32.totalorder %s784_s18, 1  ;;  %s143_s10 = scalar_lea.sflag [#allocation8], %s142_s26 }
   0xf   : > { %s714_s11 = sshra.s32 %s153_s8, 4  ;;  %p718_p11 = pneg %p872_p8  ;;  %s715_s11 = int_to_ptr.hbm [resolvable:$true] %s714_s11 }
  0x10   : > { %s716_s12 = scalar_lea.hbm %s715_s11, 32  ;;  %s721_s15 = scalar_lea.hbm %s1011_s2, 64 }
  0x11   : > { %p717_p10 = scmp.ne.s32.totalorder %s715_s11, %s716_s12  ;;  %p722_p0 = scmp.lt.s32.totalorder %s715_s11, %s1011_s2 }
  0x12   : > { %p723_p1 = scmp.lt.s32.totalorder %s721_s15, %s716_s12 }
  0x13   : > { %p719_p12 = pnand %p718_p11, %p717_p10 }
  0x14   : > { %p724_p2 = por %p723_p1, %p722_p0 }
  0x15   : > { %p720_p13 = pneg %p719_p12 }
  0x17   : > { %p725_p3 = pnand %p724_p2, %p720_p13 }
  0x19   : > { %728 = shalt.err (!%p725_p3)
}
  0x1a   : > { %s790_s24 = smov 128   ;;  %s791_s26 = smov 8  }
  0x1b   : > { %662 = dma.hbm_to_vmem [thread:$0]  (!%p872_p8), %s153_s8, 512, %s155_s7, %s143_s10, %s790_s24, %s790_s24, %s791_s26  }
  0x1c   : > { %p168_p4 = scmp.lt.s32.totalorder %s784_s18, 3 }
  0x1e   : > { %p169_p5 = pnand %p604_p9, %p168_p4 }
  0x1f   : > { %s174_s27 = sand.u32 (!%p169_p5), 1, %s776_s16  }
  0x20   : > { %172 = sbr.rel (%p169_p5) target bundleno = 976 (0x3d0), region = 32  ;;  %s605_s28 = sshll.u32 (!%p169_p5), %s174_s27, 5 }
  0x21   : > { %s175_s29 = scalar_lea.sflag (!%p169_p5), [#allocation8], %s174_s27  ;;  %s891_s30 = scalar_lea.vmem (!%p169_p5), [#allocation7], %s605_s28 }
  0x25   : > { %765 = dma.done.wait (%p861_p7), %s175_s29, 512  }
  0x26   : > { %767 = vsyncadd (%p861_p7), %s175_s29, 4294966784  ;;  %p205_p6 = scmp.lt.s32.totalorder %s840_s19, 1  ;;  %p608_p8 = scmp.ne.s32.totalorder %s840_s19, 0 }
  0x28   : > { %s206_s5 = scalar_select %p205_p6, %s840_s19, 1 }
  0x29   : > { %217 = sbr.rel (%p608_p8) target bundleno = 203 (0xcb), region = 40 }
  0x2a   : > { %s632_s6 = sshll.u32 %s206_s5, 5  ;;  %s212_s8 = scalar_lea.vmem %s1012_s3, %s206_s5 }
  0x2b   : > { %s905_s11 = scalar_lea.vmem %s1010_s1, %s632_s6  ;;  %v907_v0 = vld [vmem:[%s212_s8] sm:$0x1] }
  0x2e   : > { %v228_v1 = vld [vmem:[%s1009_s0] sm:$0xff]  ;;  %v230_v2 = vld [vmem:[%s1009_s0 + $0x8] sm:$0xff]  ;;  %v232_v3 = vld [vmem:[%s1009_s0 + $0x10] sm:$0xff] }
  0x2f   : > { %v234_v4 = vld [vmem:[%s1009_s0 + $0x18] sm:$0xff]  ;;  %v236_v5 = vld [vmem:[%s1009_s0 + $0x20] sm:$0xff]  ;;  %v238_v6 = vld [vmem:[%s1009_s0 + $0x28] sm:$0xff] }
  0x30   : > { %v240_v7 = vld [vmem:[%s1009_s0 + $0x30] sm:$0xff]  ;;  %v242_v8 = vld [vmem:[%s1009_s0 + $0x38] sm:$0xff] }
  0x31   : > { %249 = vsyncadd [#allocation9], 1024 }
  0x32   : > { %768 = dma.done.wait [#allocation9], 1024 }
  0x33   : > { %769 = vsyncadd [#allocation9], 4294966272  ;;  %v264_v9 = vld [vmem:[%s905_s11 + $0x18] sm:$0xff]  ;;  %v263_v10 = vld [vmem:[%s905_s11 + $0x10] sm:$0xff]  ;;  %vm268_vm0 = vcmask 261120   ;;  %v266_v13 = vperm.slane %v907_v0, 0 }
  0x34   : > { %634 = vmatpush.msra.mxu2 %v264_v9  ;;  %635 = vmatpush.msra.mxu3 %v264_v9  ;;  %v262_v11 = vld [vmem:[%s905_s11 + $0x8] sm:$0xff]  ;;  %v261_v12 = vld [vmem:[%s905_s11] sm:$0xff] }
  0x35   : > { %305 = vmatpush.msra.mxu0 %v264_v9  ;;  %633 = vmatpush.msra.mxu1 %v264_v9 }
  0x36   : > { %637 = vmatpush.msra.mxu2 %v263_v10  ;;  %638 = vmatpush.msra.mxu3 %v263_v10 }
  0x37   : > { %306 = vmatpush.msra.mxu0 %v263_v10  ;;  %636 = vmatpush.msra.mxu1 %v263_v10 }
  0x38   : > { %640 = vmatpush.msra.mxu2 %v262_v11  ;;  %641 = vmatpush.msra.mxu3 %v262_v11 }
  0x39   : > { %307 = vmatpush.msra.mxu0 %v262_v11  ;;  %639 = vmatpush.msra.mxu1 %v262_v11 }
  0x3a   : > { %643 = vmatpush.msra.mxu2 %v261_v12  ;;  %644 = vmatpush.msra.mxu3 %v261_v12 }
  0x3b   : > { %613 = vmatmul.msk.f32.vlgmr.msra.gmra.mxu2 %vm268_vm0, %v236_v5  ;;  %615 = vmatmul.msk.f32.vlgmr.msra.gmra.mxu3 %vm268_vm0, %v240_v7 }
  0x3c   : > { %308 = vmatpush.msra.mxu0 %v261_v12  ;;  %642 = vmatpush.msra.mxu1 %v261_v12 }
  0x3d   : > { %609 = vmatmul.msk.f32.vlgmr.msra.gmra.mxu0 %vm268_vm0, %v228_v1  ;;  %611 = vmatmul.msk.f32.vlgmr.msra.gmra.mxu1 %vm268_vm0, %v232_v3 }
  0x43   : > { %614 = vmatmul.msk.f32.gmra.mxu2 %vm268_vm0, %v238_v6  ;;  %616 = vmatmul.msk.f32.gmra.mxu3 %vm268_vm0, %v242_v8 }
  0x45   : > { %610 = vmatmul.msk.f32.gmra.mxu0 %vm268_vm0, %v230_v2  ;;  %612 = vmatmul.msk.f32.gmra.mxu1 %vm268_vm0, %v234_v4 }
  0xba   : > { %v310_v14 = vpop.f32.mrf.mxu0  ;;  %v316_v15 = vpop.f32.mrf.mxu1 }
  0xbb   : > { %v311_v16 = vadd.f32 %v310_v14, %v266_v13  ;;  %v317_v17 = vadd.f32 %v316_v15, %v266_v13 }
  0xbd   : > { %334 = vst [vmem:[#allocation3] sm:$0xff] %v311_v16 }
  0xbe   : > { %336 = vst [vmem:[#allocation3 + $0x10] sm:$0xff] %v317_v17  ;;  %v322_v18 = vpop.f32.mrf.mxu2  ;;  %v328_v19 = vpop.f32.mrf.mxu3 }
  0xbf   : > { %v323_v20 = vadd.f32 %v322_v18, %v266_v13  ;;  %v329_v21 = vadd.f32 %v328_v19, %v266_v13 }
  0xc1   : > { %338 = vst [vmem:[#allocation3 + $0x20] sm:$0xff] %v323_v20 }
  0xc2   : > { %340 = vst [vmem:[#allocation3 + $0x30] sm:$0xff] %v329_v21  ;;  %v313_v22 = vpop.f32.mrf.mxu0  ;;  %v319_v23 = vpop.f32.mrf.mxu1 }
  0xc3   : > { %v314_v24 = vadd.f32 %v313_v22, %v266_v13  ;;  %v320_v25 = vadd.f32 %v319_v23, %v266_v13 }
  0xc5   : > { %335 = vst [vmem:[#allocation3 + $0x8] sm:$0xff] %v314_v24 }
  0xc6   : > { %337 = vst [vmem:[#allocation3 + $0x18] sm:$0xff] %v320_v25  ;;  %v325_v26 = vpop.f32.mrf.mxu2  ;;  %v331_v27 = vpop.f32.mrf.mxu3 }
  0xc7   : > { %v326_v28 = vadd.f32 %v325_v26, %v266_v13  ;;  %v332_v29 = vadd.f32 %v331_v27, %v266_v13 }
  0xc9   : > { %339 = vst [vmem:[#allocation3 + $0x28] sm:$0xff] %v326_v28 }
  0xca   : > { %341 = vst [vmem:[#allocation3 + $0x38] sm:$0xff] %v332_v29 }
  0xcb PF: > { %p617_p7 = scmp.le.s32.totalorder %s840_s19, 0 }
  0xcd   : > { %345 = sbr.rel (%p617_p7) target bundleno = 362 (0x16a), region = 64 }
  0xd2   : > { %v349_v30 = vld [vmem:[%s905_s11 + $0x18] sm:$0xff]  ;;  %v348_v31 = vld [vmem:[%s905_s11 + $0x10] sm:$0xff]  ;;  %v347_v32 = vld [vmem:[%s905_s11 + $0x8] sm:$0xff]  ;;  %vm361_vm1 = vcmask 261120   ;;  %v359_v42 = vperm.slane %v907_v0, 0 }
  0xd3   : > { %646 = vmatpush.msra.mxu2 %v349_v30  ;;  %647 = vmatpush.msra.mxu3 %v349_v30  ;;  %v346_v33 = vld [vmem:[%s905_s11] sm:$0xff]  ;;  %v354_v34 = vld [vmem:[#allocation4 + $0x20] sm:$0xff]  ;;  %v356_v35 = vld [vmem:[#allocation4 + $0x30] sm:$0xff] }
  0xd4   : > { %398 = vmatpush.msra.mxu0 %v349_v30  ;;  %645 = vmatpush.msra.mxu1 %v349_v30  ;;  %v350_v36 = vld [vmem:[#allocation4] sm:$0xff]  ;;  %v352_v37 = vld [vmem:[#allocation4 + $0x10] sm:$0xff]  ;;  %v355_v38 = vld [vmem:[#allocation4 + $0x28] sm:$0xff] }
  0xd5   : > { %649 = vmatpush.msra.mxu2 %v348_v31  ;;  %650 = vmatpush.msra.mxu3 %v348_v31  ;;  %v357_v39 = vld [vmem:[#allocation4 + $0x38] sm:$0xff]  ;;  %v351_v40 = vld [vmem:[#allocation4 + $0x8] sm:$0xff] }
  0xd6   : > { %399 = vmatpush.msra.mxu0 %v348_v31  ;;  %648 = vmatpush.msra.mxu1 %v348_v31  ;;  %v353_v41 = vld [vmem:[#allocation4 + $0x18] sm:$0xff] }
  0xd7   : > { %652 = vmatpush.msra.mxu2 %v347_v32  ;;  %653 = vmatpush.msra.mxu3 %v347_v32 }
  0xd8   : > { %400 = vmatpush.msra.mxu0 %v347_v32  ;;  %651 = vmatpush.msra.mxu1 %v347_v32 }
  0xd9   : > { %655 = vmatpush.msra.mxu2 %v346_v33  ;;  %656 = vmatpush.msra.mxu3 %v346_v33 }
  0xda   : > { %622 = vmatmul.msk.f32.vlgmr.msra.gmra.mxu2 %vm361_vm1, %v354_v34  ;;  %624 = vmatmul.msk.f32.vlgmr.msra.gmra.mxu3 %vm361_vm1, %v356_v35 }
  0xdb   : > { %401 = vmatpush.msra.mxu0 %v346_v33  ;;  %654 = vmatpush.msra.mxu1 %v346_v33 }
  0xdc   : > { %618 = vmatmul.msk.f32.vlgmr.msra.gmra.mxu0 %vm361_vm1, %v350_v36  ;;  %620 = vmatmul.msk.f32.vlgmr.msra.gmra.mxu1 %vm361_vm1, %v352_v37 }
  0xe2   : > { %623 = vmatmul.msk.f32.gmra.mxu2 %vm361_vm1, %v355_v38  ;;  %625 = vmatmul.msk.f32.gmra.mxu3 %vm361_vm1, %v357_v39 }
  0xe4   : > { %619 = vmatmul.msk.f32.gmra.mxu0 %vm361_vm1, %v351_v40  ;;  %621 = vmatmul.msk.f32.gmra.mxu1 %vm361_vm1, %v353_v41 }
 0x159   : > { %v403_v43 = vpop.f32.mrf.mxu0  ;;  %v409_v44 = vpop.f32.mrf.mxu1 }
 0x15a   : > { %v404_v45 = vadd.f32 %v403_v43, %v359_v42  ;;  %v410_v46 = vadd.f32 %v409_v44, %v359_v42 }
 0x15c   : > { %427 = vst [vmem:[#allocation3] sm:$0xff] %v404_v45 }
 0x15d   : > { %429 = vst [vmem:[#allocation3 + $0x10] sm:$0xff] %v410_v46  ;;  %v415_v47 = vpop.f32.mrf.mxu2  ;;  %v421_v48 = vpop.f32.mrf.mxu3 }
 0x15e   : > { %v416_v49 = vadd.f32 %v415_v47, %v359_v42  ;;  %v422_v50 = vadd.f32 %v421_v48, %v359_v42 }
 0x160   : > { %431 = vst [vmem:[#allocation3 + $0x20] sm:$0xff] %v416_v49 }
 0x161   : > { %433 = vst [vmem:[#allocation3 + $0x30] sm:$0xff] %v422_v50  ;;  %v406_v51 = vpop.f32.mrf.mxu0  ;;  %v412_v52 = vpop.f32.mrf.mxu1 }
 0x162   : > { %v407_v53 = vadd.f32 %v406_v51, %v359_v42  ;;  %v413_v54 = vadd.f32 %v412_v52, %v359_v42 }
 0x164   : > { %428 = vst [vmem:[#allocation3 + $0x8] sm:$0xff] %v407_v53 }
 0x165   : > { %430 = vst [vmem:[#allocation3 + $0x18] sm:$0xff] %v413_v54  ;;  %v418_v55 = vpop.f32.mrf.mxu2  ;;  %v424_v56 = vpop.f32.mrf.mxu3 }
 0x166   : > { %v419_v57 = vadd.f32 %v418_v55, %v359_v42  ;;  %v425_v58 = vadd.f32 %v424_v56, %v359_v42 }
 0x168   : > { %432 = vst [vmem:[#allocation3 + $0x28] sm:$0xff] %v419_v57 }
 0x169   : > { %434 = vst [vmem:[#allocation3 + $0x38] sm:$0xff] %v425_v58 }
 0x16a PF: > { %vm435_vm2 = vcmask 261120   ;;  %v954_v59 = vld [vmem:[%s891_s30] sm:$0xff]  ;;  %v957_v60 = vld [vmem:[%s891_s30 + $0x8] sm:$0xff]  ;;  %v960_v61 = vld [vmem:[%s891_s30 + $0x10] sm:$0xff]  ;;  %p442_p9 = scmp.eq.s32.totalorder %s840_s19, 1  ;;  %v792_v62 = vmov 0.0  }
 0x16b   : > { %436 = vst.msk [vmem:[#allocation5] sm:$0xff] %vm435_vm2, %v792_v62  ;;  %v441_v63 = vld [vmem:[%s891_s30 + $0x18] sm:$0xff]  ;;  %s443_s8 = sadd.s32 1, %s840_s19  ;;  %s967_s9 = smov 0  }
 0x16c   : > { %437 = vst.msk [vmem:[#allocation6] sm:$0xff] %vm435_vm2, %v792_v62 }
 0x16d LB: >> { %470 = vmatpush.msra.mxu0 %v441_v63  ;;  %s626_s30 = sshll.u32 %s788_s9, 3  ;;  %s793_s11 = smov 64   ;;  %s788_s9 = sphi %s967_s9, %s450_s9  }
 0x16e   : >> { %s452_s10 = scalar_lea.vmem [#allocation3], %s626_s30  ;;  %s794_s25 = smov 32  }
 0x16f   : >> { %471 = vmatpush.msra.mxu0 %v960_v61  ;;  %s795_s12 = smov 96   ;;  %p628_p10 = scmp.ge.s32.totalorder %s443_s8, 2 }
 0x170   : >> { %v453_v1 = vld [vmem:[%s452_s10] sm:$0xff]  ;;  %s517_s13 = scalar_lea.vmem (!%p628_p10), [#allocation4], %s626_s30 }
 0x171   : >> { %472 = vmatpush.msra.mxu0 %v957_v60 }
 0x172   : >> { %v454_v0 = vld [vmem:[#allocation5] sm:$0xff] }
 0x173   : >> { %473 = vmatpush.msra.mxu0 %v954_v59  ;;  %v482_v5 = vld [vmem:[#allocation6] sm:$0xff] }
 0x174   : >> { %627 = vmatmul.msk.f32.vlgmr.msra.gmra.mxu0 %vm435_vm2, %v454_v0 }
 0x1f1   : >> { %v475_v2 = vpop.f32.mrf.mxu0 }
 0x1f2   : >> { %v478_v3 = vadd.f32 %v475_v2, %v453_v1 }
 0x1f4   : >> { %710 = vtanh.f32 %v478_v3 }
 0x1fa   : >> { %v711_v4 = vpop.eup %710 }
 0x1fb   : >> { %489 = vrot.lane.b32.xlu0 %v711_v4, %s793_s11  ;;  %v480_v6 = vmul.f32 0.5, %v711_v4 }
 0x1fd   : >> { %v481_v7 = vadd.f32 0.5, %v480_v6 }
 0x203   : >> { %484 = vrot.lane.b32.xlu0 %v482_v5, %s794_s25 }
 0x26d   : >> { %v490_v8 = vpop.permute.xlu0 %489 }
 0x26e   : >> { %v492_v9 = vmul.f32 %v490_v8, %v481_v7 }
 0x270   : >> { %494 = vrot.lane.b32.xlu1 %v492_v9, %s794_s25 }
 0x275   : >> { %v485_v10 = vpop.permute.xlu0 %484 }
 0x276   : >> { %v487_v11 = vmul.f32 %v485_v10, %v481_v7 }
 0x2e2   : >> { %v495_v12 = vpop.permute.xlu1 %494 }
 0x2e3   : >> { %v497_v13 = vadd.f32 %v495_v12, %v487_v11 }
 0x2e5   : >> { %712 = vtanh.f32 %v497_v13  ;;  %505 = vrot.lane.b32.xlu2 %v497_v13, %s795_s12 }
 0x2eb   : >> { %v713_v14 = vpop.eup %712 }
 0x2ec   : >> { %500 = vrot.lane.b32.xlu1 %v713_v14, %s793_s11 }
 0x33f   : >> { %v506_v15 = vpop.permute.xlu2 %505 }
 0x340   : >> { %508 = vst.msk [vmem:[#allocation6] sm:$0xff] %vm435_vm2, %v506_v15 }
 0x35e   : >> { %v501_v16 = vpop.permute.xlu1 %500 }
 0x35f   : >> { %v503_v17 = vmul.f32 %v501_v16, %v481_v7 }
 0x361   : >> { %510 = vrot.lane.b32.xlu2 %v503_v17, %s794_s25 }
 0x3b8   : >> { %516 = sbr.rel (%p628_p10) target bundleno = 958 (0x3be), region = 75 }
 0x3bb   : >> { %v511_v18 = vpop.permute.xlu2 %510 }
 0x3bc   : >> { %513 = vst.msk [vmem:[#allocation5] sm:$0xff] %vm435_vm2, %v511_v18 }
 0x3bd   : >> { %518 = vst.msk [vmem:[%s517_s13] sm:$0xff] %vm435_vm2, %v511_v18 }
 0x3be PF: >> { %p519_p11 = scmp.eq.s32.totalorder %s788_s9, 7 }
 0x3c0   : >> { %p520_p12 = pnand %p519_p11, %p442_p9 }
 0x3c2   : >> { %523 = sbr.rel (%p520_p12) target bundleno = 968 (0x3c8), region = 79 }
 0x3c7   : >> { %524 = vst.msk [vmem:[%s1013_s4] sm:$0xff] %vm435_vm2, %v511_v18 }
 0x3c8 PF: >> { %s450_s9 = sadd.s32 1, %s788_s9  }
 0x3c9   : >> { %p447_p13 = scmp.ge.s32.totalorder %s450_s9, 8  }
 0x3cb   : > { %449 = sbr.rel (!%p447_p13) target bundleno = 365 (0x16d), region = 123 }
 0x3d0 PF: > { %p14_p0 = scmp.ge.s32.totalorder %s843_s20, 4   ;;  %s1017_s15 = smov %s776_s16 }
 0x3d1   : > { %s1018_s16 = smov %s780_s17  ;;  %s1019_s17 = smov %s853_s23 }
 0x3d2   : > { %s1020_s18 = smov %s843_s20  ;;  %16 = sbr.rel (!%p14_p0) target bundleno = 3 (0x3), region = 134 }
 0x3d7   :  { %536 = vsyncpa [#allocation8], 1 }
 0x3d8   :  { %538 = vsyncpa [#allocation8 + $0x1], 1 }

</bundles_post_ra>
